<compile_context>
chip_gen: v7x
topology: tpu7x:2x2x1
jax: 0.10.0
libtpu: 0.0.40
codegen_flags: <defaults>
</compile_context>

<pallas_src>
import functools

import jax
import jax.numpy as jnp
from jax.experimental import pallas as pl
from jax.experimental.pallas import tpu as pltpu


# ----------------------------- fused kernel -------------------------------

def _fused_attention_kernel(x_ref, wqkv_ref, wout_ref, bout_ref, o_ref,
                            merged_ref, *, heads, dim_head):
    """One batch element per grid step.

    x_ref     : (1, n, dim)      f32 activations
    wqkv_ref  : (dim, 3*inner)   bf16 fused QKV weight (scale folded into q cols)
    wout_ref  : (inner, dim)     bf16 output-projection weight
    bout_ref  : (1, dim)         f32 output bias
    o_ref     : (1, n, dim)      f32 output
    merged_ref: (n, inner)       bf16 VMEM scratch -- head-merged attention out
    """
    inner = heads * dim_head
    x_bf = x_ref[0].astype(jnp.bfloat16)                       # (n, dim)

    # --- fused QKV projection: one dense matmul, cast once, drop the f32 ----
    qkv = jnp.dot(x_bf, wqkv_ref[...],
                  preferred_element_type=jnp.float32).astype(jnp.bfloat16)
    # qkv: (n, 3*inner) bf16.  Column layout matches torch .chunk(3, dim=-1)
    # followed by rearrange 'b n (h d) -> b h n d'.

    # --- per-head attention core (heads is small & static; loop unrolls) ----
    for h in range(heads):
        lo = h * dim_head
        q_h = qkv[:, lo:lo + dim_head]                          # scale pre-folded
        k_h = qkv[:, inner + lo:inner + lo + dim_head]
        v_h = qkv[:, 2 * inner + lo:2 * inner + lo + dim_head]

        # scores: contract on the last (d) dims -- no transpose of k.
        s = jnp.einsum("id,jd->ij", q_h, k_h,
                       preferred_element_type=jnp.float32)      # (n, n) f32

        # max-stabilized, normalization deferred past p@v.
        m = jnp.max(s, axis=-1, keepdims=True)
        p = jnp.exp(s - m)                                      # unnormalized
        denom = jnp.sum(p, axis=-1, keepdims=True)              # (n, 1) f32

        o_h = jnp.dot(p.astype(jnp.bfloat16), v_h,
                      preferred_element_type=jnp.float32)       # (n, d) f32
        # deferred softmax normalization, applied in f32 (EUP reciprocal).
        o_h = o_h * pl.reciprocal(denom, approx=True)

        # head merge 'h n d -> n (h d)' via static lane-slice store.
        merged_ref[:, lo:lo + dim_head] = o_h.astype(jnp.bfloat16)

    # --- fused output projection: K = inner fills the MXU -------------------
    y = jnp.dot(merged_ref[...], wout_ref[...],
                preferred_element_type=jnp.float32) + bout_ref[...]
    o_ref[0] = y.astype(o_ref.dtype)


# ----------------------------- one-time param prep --------------------------

def prepare_attention_params(params, heads, dim_head):
    """Hoisted weight re-layout + bf16 cast (call once at init, not per step)."""
    inner = heads * dim_head
    scale = dim_head ** (-0.5)
    w_qkv = params["w_qkv"]                       # (dim, 3*inner), y = x @ w
    # Fold the softmax scale into the q columns BEFORE the bf16 cast.
    w_qkv = w_qkv.at[:, :inner].multiply(scale)
    return {
        "w_qkv": w_qkv.astype(jnp.bfloat16),                 # (dim, 3*inner)
        "w_out": params["w_out"].astype(jnp.bfloat16),       # (inner, dim)
        "b_out": params["b_out"].astype(jnp.float32),        # (1, dim)
    }


# ----------------------------- wrapper --------------------------------------

def attention_forward(x, prepped, heads, dim_head):
    """Full Attention.forward (mask=None path).  x: (b, n, dim) f32."""
    b, n, dim = x.shape
    inner = heads * dim_head
    w_qkv, w_out, b_out = prepped["w_qkv"], prepped["w_out"], prepped["b_out"]

    kern = functools.partial(_fused_attention_kernel,
                             heads=heads, dim_head=dim_head)

    # Advisory cost estimate for XLA's scheduler.
    flops = (2 * b * n * dim * 3 * inner                 # fused qkv projection
             + 2 * 2 * b * heads * n * n * dim_head      # q@k^T and p@v
             + 2 * b * n * inner * dim)                  # output projection
    transcendentals = b * heads * n * n                  # exp in softmax
    bytes_accessed = int(x.size * x.dtype.itemsize
                         + w_qkv.size * w_qkv.dtype.itemsize
                         + w_out.size * w_out.dtype.itemsize
                         + b_out.size * b_out.dtype.itemsize
                         + b * n * dim * x.dtype.itemsize)

    grid_spec = pltpu.PrefetchScalarGridSpec(
        num_scalar_prefetch=0,
        grid=(b,),
        in_specs=[
            pl.BlockSpec((1, n, dim), lambda i: (i, 0, 0)),
            pl.BlockSpec((dim, 3 * inner), lambda i: (0, 0)),
            pl.BlockSpec((inner, dim), lambda i: (0, 0)),
            pl.BlockSpec((1, dim), lambda i: (0, 0)),
        ],
        out_specs=pl.BlockSpec((1, n, dim), lambda i: (i, 0, 0)),
        scratch_shapes=[pltpu.VMEM((n, inner), jnp.bfloat16)],
    )

    return pl.pallas_call(
        kern,
        out_shape=jax.ShapeDtypeStruct((b, n, dim), x.dtype),
        grid_spec=grid_spec,
        compiler_params=pltpu.CompilerParams(
            dimension_semantics=("parallel",),
            # Explicit VMEM budget: above v5e's 16 MiB default scoped limit,
            # below v7x's 64 MiB physical capacity.
            vmem_limit_bytes=48 * 1024 * 1024,
        ),
        cost_estimate=pl.CostEstimate(flops=int(flops),
                                      transcendentals=int(transcendentals),
                                      bytes_accessed=bytes_accessed),
    )(x, w_qkv, w_out, b_out)


# ----------------------------- reference (pure JAX, f32) --------------------

def attention_reference(x, params, heads, dim_head):
    b, n, dim = x.shape
    inner = heads * dim_head
    scale = dim_head ** (-0.5)
    qkv = x.reshape(b * n, dim) @ params["w_qkv"]
    qkv = qkv.reshape(b, n, 3, heads, dim_head)
    q = qkv[:, :, 0].transpose(0, 2, 1, 3)
    k = qkv[:, :, 1].transpose(0, 2, 1, 3)
    v = qkv[:, :, 2].transpose(0, 2, 1, 3)
    dots = jnp.einsum("bhid,bhjd->bhij", q, k) * scale
    attn = jax.nn.softmax(dots, axis=-1)
    out = jnp.einsum("bhij,bhjd->bhid", attn, v)
    out = out.transpose(0, 2, 1, 3).reshape(b * n, inner)
    out = out @ params["w_out"] + params["b_out"][0]
    return out.reshape(b, n, dim)


# ----------------------------- main ------------------------------------------

if __name__ == "__main__":
    # Small shapes consistent with the module (real ViT perf tuning should use
    # n >= 128, dim multiple of 128, dim_head = 64).
    B, N, DIM = 2, 8, 32
    HEADS, DIM_HEAD = 4, 16
    INNER = HEADS * DIM_HEAD

    key = jax.random.PRNGKey(0)
    kx, kq, ko, kb = jax.random.split(key, 4)

    x = jax.random.normal(kx, (B, N, DIM), dtype=jnp.float32)

    # Deterministic parameter init (PyTorch-Linear-style uniform bounds);
    # stored already transposed so that y = x @ W (+ b).
    bound_qkv = 1.0 / (DIM ** 0.5)
    bound_out = 1.0 / (INNER ** 0.5)
    params = {
        "w_qkv": jax.random.uniform(kq, (DIM, 3 * INNER), jnp.float32,
                                    -bound_qkv, bound_qkv),
        "w_out": jax.random.uniform(ko, (INNER, DIM), jnp.float32,
                                    -bound_out, bound_out),
        "b_out": jax.random.uniform(kb, (1, DIM), jnp.float32,
                                    -bound_out, bound_out),
    }

    # One-time weight re-layout (hoisted out of the per-step forward path).
    prepped = prepare_attention_params(params, HEADS, DIM_HEAD)

    y = attention_forward(x, prepped, HEADS, DIM_HEAD)
    y = jax.block_until_ready(y)

    y_ref = attention_reference(x, params, HEADS, DIM_HEAD)
    assert y.shape == (B, N, DIM)
    # bf16 MXU inputs + approx reciprocal => loosen tolerance vs f32 reference.
    assert jnp.allclose(y, y_ref, atol=2e-2, rtol=2e-2), "mismatch vs reference"

    print("KERNEL_OK")
</pallas_src>

<mosaic_0001>
module attributes {stable_mosaic.version = 11 : i64} {
  func.func @_fused_attention_kernel(%arg0: i32, %arg1: memref<1x8x32xf32, #tpu.memory_space<vmem>>, %arg2: memref<32x192xbf16, #tpu.memory_space<vmem>>, %arg3: memref<64x32xbf16, #tpu.memory_space<vmem>>, %arg4: memref<1x32xf32, #tpu.memory_space<vmem>>, %arg5: memref<1x8x32xf32, #tpu.memory_space<vmem>>, %arg6: memref<8x64xbf16, #tpu.memory_space<vmem>>) attributes {dimension_semantics = [#tpu.dimension_semantics<parallel>], iteration_bounds = array<i64: 2>, scalar_prefetch = 0 : i64, scratch_operands = 1 : i64, tpu.core_type = #tpu.core_type<tc>, window_params = [{transform_indices = @transform_0, window_bounds = array<i64: 1, 8, 32>}, {pipeline_mode = #tpu.pipeline_mode<synchronous>, transform_indices = @transform_1, window_bounds = array<i64: 32, 192>}, {pipeline_mode = #tpu.pipeline_mode<synchronous>, transform_indices = @transform_2, window_bounds = array<i64: 64, 32>}, {pipeline_mode = #tpu.pipeline_mode<synchronous>, transform_indices = @transform_3, window_bounds = array<i64: 1, 32>}, {transform_indices = @transform_4, window_bounds = array<i64: 1, 8, 32>}]} {
    %c0 = arith.constant 0 : index
    %c0_0 = arith.constant 0 : index
    %c0_1 = arith.constant 0 : index
    %0 = vector.load %arg1[%c0, %c0_0, %c0_1] : memref<1x8x32xf32, #tpu.memory_space<vmem>>, vector<1x8x32xf32>
    %1 = vector.shape_cast %0 : vector<1x8x32xf32> to vector<8x32xf32>
    %2 = arith.truncf %1 : vector<8x32xf32> to vector<8x32xbf16>
    %c0_2 = arith.constant 0 : index
    %c0_3 = arith.constant 0 : index
    %3 = vector.load %arg2[%c0_2, %c0_3] : memref<32x192xbf16, #tpu.memory_space<vmem>>, vector<32x192xbf16>
    %cst = arith.constant dense<0.000000e+00> : vector<8x192xf32>
    %4 = tpu.matmul %2, %3, %cst {dimension_numbers = #tpu.dot_dimension_numbers<[1], [0], [0], [1], [0, 0, 1, 1], [], []>} : vector<8x32xbf16>, vector<32x192xbf16>, vector<8x192xf32> -> vector<8x192xf32>
    %5 = arith.truncf %4 : vector<8x192xf32> to vector<8x192xbf16>
    %6 = vector.extract_strided_slice %5 {offsets = [0, 0], sizes = [8, 16], strides = [1, 1]} : vector<8x192xbf16> to vector<8x16xbf16>
    %7 = vector.extract_strided_slice %5 {offsets = [0, 64], sizes = [8, 16], strides = [1, 1]} : vector<8x192xbf16> to vector<8x16xbf16>
    %8 = vector.extract_strided_slice %5 {offsets = [0, 128], sizes = [8, 16], strides = [1, 1]} : vector<8x192xbf16> to vector<8x16xbf16>
    "tpu.trace_start"() <{level = 10 : i32, message = "id,jd->ij"}> : () -> ()
    %cst_4 = arith.constant dense<0.000000e+00> : vector<8x8xf32>
    %9 = tpu.matmul %6, %7, %cst_4 {dimension_numbers = #tpu.dot_dimension_numbers<[1], [1], [0], [0], [0, 0, 1, 0], [], []>} : vector<8x16xbf16>, vector<8x16xbf16>, vector<8x8xf32> -> vector<8x8xf32>
    "tpu.trace_stop"() : () -> ()
    %cst_5 = arith.constant dense<0xFF800000> : vector<8xf32>
    %10 = vector.multi_reduction <maximumf>, %9, %cst_5 [1] : vector<8x8xf32> to vector<8xf32>
    %11 = vector.shape_cast %10 : vector<8xf32> to vector<8x1xf32>
    %12 = vector.broadcast %11 : vector<8x1xf32> to vector<8x8xf32>
    %13 = arith.subf %9, %12 : vector<8x8xf32>
    %14 = math.exp %13 : vector<8x8xf32>
    %cst_6 = arith.constant dense<0.000000e+00> : vector<8xf32>
    %15 = vector.multi_reduction <add>, %14, %cst_6 [1] : vector<8x8xf32> to vector<8xf32>
    %16 = vector.shape_cast %15 : vector<8xf32> to vector<8x1xf32>
    %17 = arith.truncf %14 : vector<8x8xf32> to vector<8x8xbf16>
    %cst_7 = arith.constant dense<0.000000e+00> : vector<8x16xf32>
    %18 = tpu.matmul %17, %8, %cst_7 {dimension_numbers = #tpu.dot_dimension_numbers<[1], [0], [0], [1], [0, 0, 1, 1], [], []>} : vector<8x8xbf16>, vector<8x16xbf16>, vector<8x16xf32> -> vector<8x16xf32>
    %19 = tpu.reciprocal %16 {approx = true} : vector<8x1xf32> -> vector<8x1xf32>
    %20 = vector.broadcast %19 : vector<8x1xf32> to vector<8x16xf32>
    %21 = arith.mulf %18, %20 : vector<8x16xf32>
    %22 = arith.truncf %21 : vector<8x16xf32> to vector<8x16xbf16>
    %c0_8 = arith.constant 0 : index
    %c0_9 = arith.constant 0 : index
    %23 = vector.load %arg6[%c0_8, %c0_9] : memref<8x64xbf16, #tpu.memory_space<vmem>>, vector<8x16xbf16>
    tpu.vector_store %arg6[%c0_8, %c0_9], %22 {strides = array<i32>} : memref<8x64xbf16, #tpu.memory_space<vmem>>, vector<8x16xbf16>,
    %24 = vector.extract_strided_slice %5 {offsets = [0, 16], sizes = [8, 16], strides = [1, 1]} : vector<8x192xbf16> to vector<8x16xbf16>
    %25 = vector.extract_strided_slice %5 {offsets = [0, 80], sizes = [8, 16], strides = [1, 1]} : vector<8x192xbf16> to vector<8x16xbf16>
    %26 = vector.extract_strided_slice %5 {offsets = [0, 144], sizes = [8, 16], strides = [1, 1]} : vector<8x192xbf16> to vector<8x16xbf16>
    "tpu.trace_start"() <{level = 10 : i32, message = "id,jd->ij"}> : () -> ()
    %cst_10 = arith.constant dense<0.000000e+00> : vector<8x8xf32>
    %27 = tpu.matmul %24, %25, %cst_10 {dimension_numbers = #tpu.dot_dimension_numbers<[1], [1], [0], [0], [0, 0, 1, 0], [], []>} : vector<8x16xbf16>, vector<8x16xbf16>, vector<8x8xf32> -> vector<8x8xf32>
    "tpu.trace_stop"() : () -> ()
    %cst_11 = arith.constant dense<0xFF800000> : vector<8xf32>
    %28 = vector.multi_reduction <maximumf>, %27, %cst_11 [1] : vector<8x8xf32> to vector<8xf32>
    %29 = vector.shape_cast %28 : vector<8xf32> to vector<8x1xf32>
    %30 = vector.broadcast %29 : vector<8x1xf32> to vector<8x8xf32>
    %31 = arith.subf %27, %30 : vector<8x8xf32>
    %32 = math.exp %31 : vector<8x8xf32>
    %cst_12 = arith.constant dense<0.000000e+00> : vector<8xf32>
    %33 = vector.multi_reduction <add>, %32, %cst_12 [1] : vector<8x8xf32> to vector<8xf32>
    %34 = vector.shape_cast %33 : vector<8xf32> to vector<8x1xf32>
    %35 = arith.truncf %32 : vector<8x8xf32> to vector<8x8xbf16>
    %cst_13 = arith.constant dense<0.000000e+00> : vector<8x16xf32>
    %36 = tpu.matmul %35, %26, %cst_13 {dimension_numbers = #tpu.dot_dimension_numbers<[1], [0], [0], [1], [0, 0, 1, 1], [], []>} : vector<8x8xbf16>, vector<8x16xbf16>, vector<8x16xf32> -> vector<8x16xf32>
    %37 = tpu.reciprocal %34 {approx = true} : vector<8x1xf32> -> vector<8x1xf32>
    %38 = vector.broadcast %37 : vector<8x1xf32> to vector<8x16xf32>
    %39 = arith.mulf %36, %38 : vector<8x16xf32>
    %40 = arith.truncf %39 : vector<8x16xf32> to vector<8x16xbf16>
    %c0_14 = arith.constant 0 : index
    %c16 = arith.constant 16 : index
    %41 = vector.load %arg6[%c0_14, %c16] : memref<8x64xbf16, #tpu.memory_space<vmem>>, vector<8x16xbf16>
    tpu.vector_store %arg6[%c0_14, %c16], %40 {strides = array<i32>} : memref<8x64xbf16, #tpu.memory_space<vmem>>, vector<8x16xbf16>,
    %42 = vector.extract_strided_slice %5 {offsets = [0, 32], sizes = [8, 16], strides = [1, 1]} : vector<8x192xbf16> to vector<8x16xbf16>
    %43 = vector.extract_strided_slice %5 {offsets = [0, 96], sizes = [8, 16], strides = [1, 1]} : vector<8x192xbf16> to vector<8x16xbf16>
    %44 = vector.extract_strided_slice %5 {offsets = [0, 160], sizes = [8, 16], strides = [1, 1]} : vector<8x192xbf16> to vector<8x16xbf16>
    "tpu.trace_start"() <{level = 10 : i32, message = "id,jd->ij"}> : () -> ()
    %cst_15 = arith.constant dense<0.000000e+00> : vector<8x8xf32>
    %45 = tpu.matmul %42, %43, %cst_15 {dimension_numbers = #tpu.dot_dimension_numbers<[1], [1], [0], [0], [0, 0, 1, 0], [], []>} : vector<8x16xbf16>, vector<8x16xbf16>, vector<8x8xf32> -> vector<8x8xf32>
    "tpu.trace_stop"() : () -> ()
    %cst_16 = arith.constant dense<0xFF800000> : vector<8xf32>
    %46 = vector.multi_reduction <maximumf>, %45, %cst_16 [1] : vector<8x8xf32> to vector<8xf32>
    %47 = vector.shape_cast %46 : vector<8xf32> to vector<8x1xf32>
    %48 = vector.broadcast %47 : vector<8x1xf32> to vector<8x8xf32>
    %49 = arith.subf %45, %48 : vector<8x8xf32>
    %50 = math.exp %49 : vector<8x8xf32>
    %cst_17 = arith.constant dense<0.000000e+00> : vector<8xf32>
    %51 = vector.multi_reduction <add>, %50, %cst_17 [1] : vector<8x8xf32> to vector<8xf32>
    %52 = vector.shape_cast %51 : vector<8xf32> to vector<8x1xf32>
    %53 = arith.truncf %50 : vector<8x8xf32> to vector<8x8xbf16>
    %cst_18 = arith.constant dense<0.000000e+00> : vector<8x16xf32>
    %54 = tpu.matmul %53, %44, %cst_18 {dimension_numbers = #tpu.dot_dimension_numbers<[1], [0], [0], [1], [0, 0, 1, 1], [], []>} : vector<8x8xbf16>, vector<8x16xbf16>, vector<8x16xf32> -> vector<8x16xf32>
    %55 = tpu.reciprocal %52 {approx = true} : vector<8x1xf32> -> vector<8x1xf32>
    %56 = vector.broadcast %55 : vector<8x1xf32> to vector<8x16xf32>
    %57 = arith.mulf %54, %56 : vector<8x16xf32>
    %58 = arith.truncf %57 : vector<8x16xf32> to vector<8x16xbf16>
    %c0_19 = arith.constant 0 : index
    %c32 = arith.constant 32 : index
    %59 = vector.load %arg6[%c0_19, %c32] : memref<8x64xbf16, #tpu.memory_space<vmem>>, vector<8x16xbf16>
    tpu.vector_store %arg6[%c0_19, %c32], %58 {strides = array<i32>} : memref<8x64xbf16, #tpu.memory_space<vmem>>, vector<8x16xbf16>,
    %60 = vector.extract_strided_slice %5 {offsets = [0, 48], sizes = [8, 16], strides = [1, 1]} : vector<8x192xbf16> to vector<8x16xbf16>
    %61 = vector.extract_strided_slice %5 {offsets = [0, 112], sizes = [8, 16], strides = [1, 1]} : vector<8x192xbf16> to vector<8x16xbf16>
    %62 = vector.extract_strided_slice %5 {offsets = [0, 176], sizes = [8, 16], strides = [1, 1]} : vector<8x192xbf16> to vector<8x16xbf16>
    "tpu.trace_start"() <{level = 10 : i32, message = "id,jd->ij"}> : () -> ()
    %cst_20 = arith.constant dense<0.000000e+00> : vector<8x8xf32>
    %63 = tpu.matmul %60, %61, %cst_20 {dimension_numbers = #tpu.dot_dimension_numbers<[1], [1], [0], [0], [0, 0, 1, 0], [], []>} : vector<8x16xbf16>, vector<8x16xbf16>, vector<8x8xf32> -> vector<8x8xf32>
    "tpu.trace_stop"() : () -> ()
    %cst_21 = arith.constant dense<0xFF800000> : vector<8xf32>
    %64 = vector.multi_reduction <maximumf>, %63, %cst_21 [1] : vector<8x8xf32> to vector<8xf32>
    %65 = vector.shape_cast %64 : vector<8xf32> to vector<8x1xf32>
    %66 = vector.broadcast %65 : vector<8x1xf32> to vector<8x8xf32>
    %67 = arith.subf %63, %66 : vector<8x8xf32>
    %68 = math.exp %67 : vector<8x8xf32>
    %cst_22 = arith.constant dense<0.000000e+00> : vector<8xf32>
    %69 = vector.multi_reduction <add>, %68, %cst_22 [1] : vector<8x8xf32> to vector<8xf32>
    %70 = vector.shape_cast %69 : vector<8xf32> to vector<8x1xf32>
    %71 = arith.truncf %68 : vector<8x8xf32> to vector<8x8xbf16>
    %cst_23 = arith.constant dense<0.000000e+00> : vector<8x16xf32>
    %72 = tpu.matmul %71, %62, %cst_23 {dimension_numbers = #tpu.dot_dimension_numbers<[1], [0], [0], [1], [0, 0, 1, 1], [], []>} : vector<8x8xbf16>, vector<8x16xbf16>, vector<8x16xf32> -> vector<8x16xf32>
    %73 = tpu.reciprocal %70 {approx = true} : vector<8x1xf32> -> vector<8x1xf32>
    %74 = vector.broadcast %73 : vector<8x1xf32> to vector<8x16xf32>
    %75 = arith.mulf %72, %74 : vector<8x16xf32>
    %76 = arith.truncf %75 : vector<8x16xf32> to vector<8x16xbf16>
    %c0_24 = arith.constant 0 : index
    %c48 = arith.constant 48 : index
    %77 = vector.load %arg6[%c0_24, %c48] : memref<8x64xbf16, #tpu.memory_space<vmem>>, vector<8x16xbf16>
    tpu.vector_store %arg6[%c0_24, %c48], %76 {strides = array<i32>} : memref<8x64xbf16, #tpu.memory_space<vmem>>, vector<8x16xbf16>,
    %c0_25 = arith.constant 0 : index
    %c0_26 = arith.constant 0 : index
    %78 = vector.load %arg6[%c0_25, %c0_26] : memref<8x64xbf16, #tpu.memory_space<vmem>>, vector<8x64xbf16>
    %c0_27 = arith.constant 0 : index
    %c0_28 = arith.constant 0 : index
    %79 = vector.load %arg3[%c0_27, %c0_28] : memref<64x32xbf16, #tpu.memory_space<vmem>>, vector<64x32xbf16>
    %cst_29 = arith.constant dense<0.000000e+00> : vector<8x32xf32>
    %80 = tpu.matmul %78, %79, %cst_29 {dimension_numbers = #tpu.dot_dimension_numbers<[1], [0], [0], [1], [0, 0, 1, 1], [], []>} : vector<8x64xbf16>, vector<64x32xbf16>, vector<8x32xf32> -> vector<8x32xf32>
    %c0_30 = arith.constant 0 : index
    %c0_31 = arith.constant 0 : index
    %81 = vector.load %arg4[%c0_30, %c0_31] : memref<1x32xf32, #tpu.memory_space<vmem>>, vector<1x32xf32>
    %82 = vector.broadcast %81 : vector<1x32xf32> to vector<8x32xf32>
    %83 = arith.addf %80, %82 : vector<8x32xf32>
    %c0_32 = arith.constant 0 : index
    %c0_33 = arith.constant 0 : index
    %c0_34 = arith.constant 0 : index
    %84 = vector.load %arg5[%c0_32, %c0_33, %c0_34] : memref<1x8x32xf32, #tpu.memory_space<vmem>>, vector<1x8x32xf32>
    %85 = vector.shape_cast %84 : vector<1x8x32xf32> to vector<8x32xf32>
    %86 = vector.shape_cast %83 : vector<8x32xf32> to vector<1x8x32xf32>
    tpu.vector_store %arg5[%c0_32, %c0_33, %c0_34], %86 {strides = array<i32>} : memref<1x8x32xf32, #tpu.memory_space<vmem>>, vector<1x8x32xf32>,
    return
  }
  func.func @transform_0(%arg0: i32) -> (i32, i32, i32) {
    %c0_i32 = arith.constant 0 : i32
    %c0_i32_0 = arith.constant 0 : i32
    %c0_i32_1 = arith.constant 0 : i32
    return %arg0, %c0_i32, %c0_i32_0 : i32, i32, i32
  }
  func.func @transform_1(%arg0: i32) -> (i32, i32) {
    %c0_i32 = arith.constant 0 : i32
    %c0_i32_0 = arith.constant 0 : i32
    %c0_i32_1 = arith.constant 0 : i32
    return %c0_i32, %c0_i32_0 : i32, i32
  }
  func.func @transform_2(%arg0: i32) -> (i32, i32) {
    %c0_i32 = arith.constant 0 : i32
    %c0_i32_0 = arith.constant 0 : i32
    %c0_i32_1 = arith.constant 0 : i32
    return %c0_i32, %c0_i32_0 : i32, i32
  }
  func.func @transform_3(%arg0: i32) -> (i32, i32) {
    %c0_i32 = arith.constant 0 : i32
    %c0_i32_0 = arith.constant 0 : i32
    %c0_i32_1 = arith.constant 0 : i32
    return %c0_i32, %c0_i32_0 : i32, i32
  }
  func.func @transform_4(%arg0: i32) -> (i32, i32, i32) {
    %c0_i32 = arith.constant 0 : i32
    %c0_i32_0 = arith.constant 0 : i32
    %c0_i32_1 = arith.constant 0 : i32
    return %arg0, %c0_i32, %c0_i32_0 : i32, i32, i32
  }
}

</mosaic_0001>

<bundles_post_ra>
// kernel: tpu_custom_call.1
= control target key start
LH: loop header
LB: loop body
LE: loop exit
PB: predicated region body
PF: predicated region fallthrough
CT: control target
= control target key end

     0   :  { %9 = vsyncpa [#allocation4], 0  ;;  %s1388_s0 = inlined_call_operand.vmem [shape: f32[2,8,32], index: 0, kind: input, shape index: {}]   ;;  %s1389_s1 = inlined_call_operand.vmem [shape: bf16[32,192], index: 1, kind: input, shape index: {}]   ;;  %s1390_s2 = inlined_call_operand.vmem [shape: bf16[64,32], index: 2, kind: input, shape index: {}]   ;;  %s1391_s3 = inlined_call_operand.vmem [shape: f32[1,32], index: 3, kind: input, shape index: {}]   ;;  %s1392_s4 = inlined_call_operand.hbm [shape: f32[2,8,32], index: 4, kind: output, shape index: {}]  }
   0x1   :  { %11 = vsyncpa [#allocation4 + $0x1], 0  ;;  %s1187_s15 = smov 0   ;;  %s1189_s16 = smov 0  }
   0x2   :  { %s1191_s17 = smov 0   ;;  %s1193_s18 = smov 0  }
   0x3 LB: > { %s1208_s19 = sadd.s32 4294967295, %s1149_s18   ;;  %s896_s20 = sadd.s32 4294967294, %s1149_s18   ;;  %s1149_s18 = sphi %s1193_s18, %s1398_s18   ;;  %s1145_s17 = sphi %s1191_s17, %s1397_s17   ;;  %s1141_s16 = sphi %s1189_s16, %s1396_s16   ;;  %s1137_s15 = sphi %s1187_s15, %s1395_s15  }
   0x4   : > { %s1212_s21 = sadd.s32 1, %s1149_s18   ;;  %s113_s22 = sadd.s32 1, %s1145_s17 }
   0x5   : > { %s110_s23 = ssub.s32 %s1149_s18, %s1212_s21  ;;  %p123_p0 = scmp.ne.s32.totalorder %s1145_s17, %s1141_s16 }
   0x6   : > { %p111_p1 = scmp.eq.s32.totalorder %s110_s23, 0  ;;  %p124_p2 = scmp.eq.s32.totalorder %s1208_s19, 1 }
   0x7   : > { %p129_p3 = scmp.ne.s32.totalorder %s1141_s16, %s1137_s15  ;;  %p130_p4 = scmp.eq.s32.totalorder %s896_s20, 1 }
   0x8   : > { %s1223_s24 = scalar_select %p111_p1, %s1145_s17, %s113_s22  }
   0x9   : > { %p1225_p5 = por %p124_p2, %p123_p0  ;;  %p1229_p6 = por %p130_p4, %p129_p3 }
   0xa   : > { %p899_p7 = scmp.ge.s32.totalorder %s1149_s18, 1  ;;  %p164_p8 = scmp.lt.s32.totalorder %s1149_s18, 3 }
   0xc   : > { %p165_p9 = pnand %p899_p7, %p164_p8 }
   0xd   : > { %v1061_v0 = vld [vmem:[%s1389_s1 + $0x4] ss:$8 sps:$4 sm:$0xff] (!%p165_p9)   ;;  %p189_p10 = scmp.lt.s32.totalorder (!%p165_p9), %s1208_s19, 1  ;;  %v1063_v1 = vld [vmem:[%s1389_s1] ss:$8 sps:$4 sm:$0xff] (!%p165_p9)   ;;  %v1151_v2 = vmov (!%p165_p9), 0  }
   0xe   : > { %168 = sbr.rel (%p165_p9) target bundleno = 1357 (0x54d), region = 36  ;;  %256 = vmatprep.mubr.bf16.mxu0 (!%p165_p9), %v1151_v2  ;;  %224 = vmatprep.subr.bf16.mxu0 (!%p165_p9), %v1061_v0  ;;  %v1064_v3 = vld [vmem:[%s1389_s1 + $0x14] ss:$8 sps:$4 sm:$0xff] (!%p165_p9)   ;;  %v1066_v4 = vld [vmem:[%s1389_s1 + $0x10] ss:$8 sps:$4 sm:$0xff] (!%p165_p9)   ;;  %vm220_vm0 = vcmask (!%p165_p9), 261120  }
   0xf   : > { %225 = vmatpush1.bf16.msra.mxu0 (!%p165_p9), %v1063_v1  ;;  %v1152_v7 = vmov (!%p165_p9), 0.0   ;;  %vm1153_vm1 = vmmov (!%p165_p9), 0   ;;  %vm331_vm2 = vcmask (!%p165_p9), 1043456   ;;  %s1154_s14 = smov (!%p165_p9), 112   ;;  %s1155_s20 = smov (!%p165_p9), 64   ;;  %vm270_vm3 = vcmask (!%p165_p9), 130048  }
  0x10   : > { %226 = vmatprep.subr.bf16.mxu0 (!%p165_p9), %v1064_v3  ;;  %952 = vmatprep.subr.bf16.mxu1 (!%p165_p9), %v1152_v7  ;;  %s1156_s22 = smov (!%p165_p9), 32   ;;  %s1157_s23 = smov (!%p165_p9), 48   ;;  %vm317_vm4 = vcmask (!%p165_p9), 64512   ;;  %vm378_vm5 = vcmask (!%p165_p9), 125952   ;;  %vm498_vm6 = vcmask (!%p165_p9), 257152   ;;  %vm617_vm7 = vcmask (!%p165_p9), 388352  }
  0x11   : > { %954 = vmatprep.mubr.msk.bf16.mxu1 (!%p165_p9), %vm1153_vm1, %v1152_v7  ;;  %s1158_s27 = smov (!%p165_p9), 16   ;;  %s1159_s28 = smov (!%p165_p9), 96   ;;  %vm736_vm8 = vcmask (!%p165_p9), 519552   ;;  %vm778_vm9 = vcmask (!%p165_p9), 523264  }
  0x12   : > { %s1160_s29 = smov (!%p165_p9), 80   ;;  %s186_s12 = sand.u32 (!%p165_p9), 1, %s1141_s16  }
  0x13   : > { %227 = vmatpush1.bf16.msra.mxu0 (!%p165_p9), %v1066_v4  ;;  %s1161_s6 = smov (!%p165_p9), [#allocation3]  }
  0x14   : > { %958 = vmatprep.subr.bf16.mxu0 (!%p165_p9), %v1152_v7  ;;  %s1091_s7 = sshll.u32 (!%p165_p9), %s1161_s6, 4  ;;  %s1092_s7 = int_to_ptr.vmem [resolvable:$false] %s1091_s7 }
  0x15   : > { %s190_s9 = scalar_select %p189_p10, %s1208_s19, 1 }
  0x16   : > { %s1093_s8 = scalar_lea.vmem %s1092_s7, 256 }
  0x17   : > { %s901_s10 = sshll.u32 %s190_s9, 3 }
  0x18   : > { %s192_s13 = scalar_lea.vmem %s1388_s0, %s901_s10 }
  0x19   : > { %v194_v5 = vld [vmem:[%s192_s13] sm:$0xff]  ;;  %s900_s13 = sshll.u32 %s186_s12, 3 }
  0x1a   : > { %v195_v6 = vpack.c.bf16 %v194_v5, %v194_v5 }
  0x1c   : > { %906 = vmatmul.mubr.msk.bf16.vlgmr.msra.gmra.mrb[0].mxu0 %vm220_vm0, %v195_v6 }
  0x1d   : > { %960 = vmatprep.mubr.msk.bf16.mxu0 %vm1153_vm1, %v1152_v7 }
  0xef   : > { %v258_v8 = vpop.f32.mrb[0].mxu0 }
  0xf0   : > { %v265_v9 = vpack.c.bf16 %v258_v8, %v258_v8  ;;  %v260_v10 = vpop.f32.mrb[1].mxu0 }
  0xf1   : > { %v1259_v11 = vpack.c.bf16 %v260_v10, %v260_v10  ;;  %v262_v12 = vpop.f32.mrb[2].mxu0 }
  0xf2   : > { %380 = vrot.lane.b32.xlu1 %v265_v9, %s1154_s14  ;;  %268 = vrot.lane.b32.xlu0 %v265_v9, %s1155_s20  ;;  %v263_v13 = vpop.f32.mrb[3].mxu0 }
  0xf3   : > { %v333_v14 = vsel %vm331_vm2, %v1259_v11, 0 }
  0xf4   : > { %959 = vmatpush3.bf16.msra.mxu0 %v333_v14 }
  0xf5   : > { %970 = vmatprep.subr.bf16.mxu0 %v1152_v7 }
  0xf6   : > { %502 = vrot.lane.b32.xlu1 %v265_v9, %s1156_s22  ;;  %382 = vrot.lane.b32.xlu0 %v265_v9, %s1157_s23 }
  0xfa   : > { %621 = vrot.lane.b32.xlu1 %v265_v9, %s1158_s27  ;;  %500 = vrot.lane.b32.xlu0 %v265_v9, %s1159_s28 }
  0xfe   : > { %619 = vrot.lane.b32.xlu0 %v265_v9, %s1160_s29 }
 0x164   : > { %v269_v15 = vpop.permute.xlu0 %268  ;;  %v381_v18 = vpop.permute.xlu1 %380 }
 0x165   : > { %v275_v16 = vsel %vm270_vm3, %v269_v15, 0 }
 0x166   : > { %953 = vmatpush3.bf16.xpose.msra.mxu1 %v275_v16 }
 0x167   : > { %964 = vmatprep.subr.bf16.mxu1 %v1152_v7 }
 0x168   : > { %v383_v17 = vpop.permute.xlu0 %382  ;;  %v503_v20 = vpop.permute.xlu1 %502 }
 0x169   : > { %v388_v19 = vsel %vm270_vm3, %v383_v17, 0  ;;  %v508_v21 = vsel %vm270_vm3, %v503_v20, 0 }
 0x16c   : > { %v622_v22 = vpop.permute.xlu1 %621  ;;  %v501_v23 = vpop.permute.xlu0 %500 }
 0x16d   : > { %955 = vmatmul.mubr.msk.bf16.vlgmr.msra.gmra.mrb[0].mxu1 %vm270_vm3, %v265_v9  ;;  %v627_v24 = vsel %vm270_vm3, %v622_v22, 0 }
 0x16e   : > { %965 = vmatpush3.bf16.xpose.msra.mxu1 %v388_v19  ;;  %966 = vmatprep.mubr.msk.bf16.mxu1 %vm1153_vm1, %v1152_v7 }
 0x16f   : > { %976 = vmatprep.subr.bf16.mxu1 %v1152_v7 }
 0x170   : > { %v620_v25 = vpop.permute.xlu0 %619 }
 0x175   : > { %967 = vmatmul.mubr.msk.bf16.vlgmr.msra.gmra.mrb[4].mxu1 %vm270_vm3, %v381_v18 }
 0x176   : > { %977 = vmatpush3.bf16.xpose.msra.mxu1 %v508_v21  ;;  %978 = vmatprep.mubr.msk.bf16.mxu1 %vm1153_vm1, %v1152_v7 }
 0x177   : > { %988 = vmatprep.subr.bf16.mxu1 %v1152_v7 }
 0x17d   : > { %979 = vmatmul.mubr.msk.bf16.vlgmr.msra.gmra.mrb[8].mxu1 %vm270_vm3, %v501_v23 }
 0x17e   : > { %989 = vmatpush3.bf16.xpose.msra.mxu1 %v627_v24  ;;  %990 = vmatprep.mubr.msk.bf16.mxu1 %vm1153_vm1, %v1152_v7 }
 0x17f   : > { %1000 = vmatprep.subr.bf16.mxu1 %v1152_v7 }
 0x185   : > { %991 = vmatmul.mubr.msk.bf16.vlgmr.msra.gmra.mrb[12].mxu1 %vm270_vm3, %v620_v25 }
 0x186   : > { %1008 = vmatprep.mubr.msk.bf16.mxu1 %vm1153_vm1, %v1152_v7 }
 0x240   : > { %v311_v26 = vpop.f32.mrb[0].mxu1 }
 0x241   : > { %v956_v27 = vpop.f32.mrb[1].mxu1  ;;  %v318_v28 = vsel %vm317_vm4, %v311_v26, -inf }
 0x242   : > { %319 = vmax.xlane.f32.xlu1 %v318_v28  ;;  %v314_v29 = vpop.f32.mrb[2].mxu1 }
 0x243   : > { %v957_v30 = vpop.f32.mrb[3].mxu1 }
 0x244   : > { %v1068_v30 = vld [vmem:[%s1390_s2 + $0x8] sm:$0xff]  }
 0x248   : > { %v424_v31 = vpop.f32.mrb[4].mxu1 }
 0x249   : > { %v968_v32 = vpop.f32.mrb[5].mxu1  ;;  %v430_v33 = vsel %vm317_vm4, %v424_v31, -inf }
 0x24a   : > { %431 = vmax.xlane.f32.xlu0 %v430_v33  ;;  %v427_v34 = vpop.f32.mrb[6].mxu1 }
 0x24b   : > { %v969_v35 = vpop.f32.mrb[7].mxu1 }
 0x250   : > { %v544_v36 = vpop.f32.mrb[8].mxu1 }
 0x251   : > { %v980_v37 = vpop.f32.mrb[9].mxu1  ;;  %v550_v38 = vsel %vm317_vm4, %v544_v36, -inf }
 0x252   : > { %551 = vmax.xlane.f32.xlu0 %v550_v38  ;;  %v547_v39 = vpop.f32.mrb[10].mxu1 }
 0x253   : > { %v981_v40 = vpop.f32.mrb[11].mxu1  ;;  %560 = vrot.lane.b32.xlu1 %v1259_v11, %s1159_s28 }
 0x254   : > { %v1069_v40 = vld [vmem:[%s1390_s2 + $0x10] sm:$0xff]  }
 0x258   : > { %v663_v41 = vpop.f32.mrb[12].mxu1 }
 0x259   : > { %v992_v42 = vpop.f32.mrb[13].mxu1  ;;  %v669_v45 = vsel %vm317_vm4, %v663_v41, -inf }
 0x25a   : > { %v666_v43 = vpop.f32.mrb[14].mxu1 }
 0x25b   : > { %v993_v44 = vpop.f32.mrb[15].mxu1 }
 0x268   : > { %441 = vrot.lane.b32.xlu0 %v1259_v11, %s1154_s14 }
 0x277   : > { %670 = vmax.xlane.f32.xlu1 %v669_v45 }
 0x288   : > { %679 = vrot.lane.b32.xlu1 %v1259_v11, %s1160_s29 }
 0x2cf   : > { %v320_v46 = vpop.xlane.xlu1 %319 }
 0x2d0   : > { %v321_v47 = vsub.f32 %v311_v26, %v320_v46  ;;  %v1067_v26 = vld [vmem:[%s1390_s2] sm:$0xff]  }
 0x2d1   : > { %1001 = vmatpush3.bf16.msra.mxu1 %v1067_v26 }
 0x2d2   : > { %v322_v48 = vmul.f32 1.442695, %v321_v47  ;;  %1002 = vmatprep.subr.bf16.mxu1 %v1152_v7 }
 0x2d3   : > { %v561_v60 = vpop.permute.xlu1 %560 }
 0x2d4   : > { %1071 = vpow2.f32 %v322_v48  ;;  %v566_v63 = vsel %vm331_vm2, %v561_v60, 0 }
 0x2d5   : > { %1003 = vmatpush3.bf16.msra.mxu1 %v1068_v30 }
 0x2d6   : > { %1004 = vmatprep.subr.bf16.mxu1 %v1152_v7 }
 0x2d7   : > { %v432_v49 = vpop.xlane.xlu0 %431 }
 0x2d8   : > { %v433_v50 = vsub.f32 %v424_v31, %v432_v49 }
 0x2d9   : > { %1005 = vmatpush3.bf16.msra.mxu1 %v1069_v40 }
 0x2da   : > { %v434_v51 = vmul.f32 1.442695, %v433_v50  ;;  %1006 = vmatprep.subr.bf16.mxu1 %v1152_v7 }
 0x2dc   : > { %1073 = vpow2.f32 %v434_v51 }
 0x2de   : > { %v1072_v52 = vpop.eup %1071 }
 0x2df   : > { %v552_v53 = vpop.xlane.xlu0 %551  ;;  %v327_v54 = vpack.c.bf16 %v1072_v52, %v1072_v52  ;;  %v324_v12 = vsel %vm317_vm4, %v1072_v52, 0.0  ;;  %v918_v52 = vld [vmem:[%s1391_s3] ss:$0 sm:$0xff] }
 0x2e0   : > { %v553_v55 = vsub.f32 %v544_v36, %v552_v53 }
 0x2e1   : > { %961 = vmatmul.mubr.msk.bf16.vlgmr.msra.gmra.mrb[4].mxu0 %vm317_vm4, %v327_v54 }
 0x2e2   : > { %v554_v56 = vmul.f32 1.442695, %v553_v55  ;;  %972 = vmatprep.mubr.msk.bf16.mxu0 %vm1153_vm1, %v1152_v7 }
 0x2e3   : > { %v442_v57 = vpop.permute.xlu0 %441 }
 0x2e4   : > { %1075 = vpow2.f32 %v554_v56  ;;  %v447_v58 = vsel %vm331_vm2, %v442_v57, 0 }
 0x2e5   : > { %971 = vmatpush3.bf16.msra.mxu0 %v447_v58 }
 0x2e6   : > { %v1074_v59 = vpop.eup %1073  ;;  %982 = vmatprep.subr.bf16.mxu0 %v1152_v7 }
 0x2e7   : > { %v436_v61 = vsel %vm317_vm4, %v1074_v59, 0.0  ;;  %v439_v62 = vpack.c.bf16 %v1074_v59, %v1074_v59 }
 0x2e8   : > { %437 = vadd.xlane.f32.xlu0 %v436_v61 }
 0x2e9   : > { %973 = vmatmul.mubr.msk.bf16.vlgmr.msra.gmra.mrb[8].mxu0 %vm317_vm4, %v439_v62 }
 0x2ea   : > { %983 = vmatpush3.bf16.msra.mxu0 %v566_v63  ;;  %984 = vmatprep.mubr.msk.bf16.mxu0 %vm1153_vm1, %v1152_v7 }
 0x2eb   : > { %994 = vmatprep.subr.bf16.mxu0 %v1152_v7 }
 0x2ee   : > { %v1076_v0 = vpop.eup %1075 }
 0x2ef   : > { %v556_v1 = vsel %vm317_vm4, %v1076_v0, 0.0  ;;  %v559_v2 = vpack.c.bf16 %v1076_v0, %v1076_v0 }
 0x2f0   : > { %557 = vadd.xlane.f32.xlu1 %v556_v1 }
 0x2f1   : > { %985 = vmatmul.mubr.msk.bf16.vlgmr.msra.gmra.mrb[12].mxu0 %vm317_vm4, %v559_v2 }
 0x2f2   : > { %996 = vmatprep.mubr.msk.bf16.mxu0 %vm1153_vm1, %v1152_v7 }
 0x304   : > { %v671_v3 = vpop.xlane.xlu1 %670 }
 0x305   : > { %v672_v4 = vsub.f32 %v663_v41, %v671_v3  ;;  %v1070_v41 = vld [vmem:[%s1390_s2 + $0x18] sm:$0xff]  }
 0x306   : > { %1007 = vmatpush3.bf16.msra.mxu1 %v1070_v41 }
 0x307   : > { %v673_v5 = vmul.f32 1.442695, %v672_v4 }
 0x308   : > { %v680_v6 = vpop.permute.xlu1 %679 }
 0x309   : > { %1077 = vpow2.f32 %v673_v5  ;;  %v685_v8 = vsel %vm331_vm2, %v680_v6, 0 }
 0x30a   : > { %995 = vmatpush3.bf16.msra.mxu0 %v685_v8 }
 0x313   : > { %v1078_v9 = vpop.eup %1077 }
 0x314   : > { %v675_v10 = vsel %vm317_vm4, %v1078_v9, 0.0  ;;  %v678_v11 = vpack.c.bf16 %v1078_v9, %v1078_v9 }
 0x315   : > { %676 = vadd.xlane.f32.xlu0 %v675_v10 }
 0x316   : > { %997 = vmatmul.mubr.msk.bf16.vlgmr.msra.gmra.mrb[16].mxu0 %vm317_vm4, %v678_v11 }
 0x319   : > { %325 = vadd.xlane.f32.xlu0 %v324_v12 }
 0x375   : > { %v438_v13 = vpop.xlane.xlu0 %437 }
 0x37d   : > { %v558_v21 = vpop.xlane.xlu1 %557 }
 0x3a2   : > { %v677_v14 = vpop.xlane.xlu0 %676 }
 0x3a6   : > { %v326_v15 = vpop.xlane.xlu0 %325 }
 0x3a7   : > { %1079 = vrcp.f32 %v326_v15 }
 0x3a8   : > { %1081 = vrcp.f32 %v438_v13 }
 0x3a9   : > { %1083 = vrcp.f32 %v558_v21 }
 0x3aa   : > { %1085 = vrcp.f32 %v677_v14 }
 0x3b1   : > { %v1080_v16 = vpop.eup %1079 }
 0x3b2   : > { %v1082_v24 = vpop.eup %1081 }
 0x3b3   : > { %v1084_v33 = vpop.eup %1083 }
 0x3b4   : > { %v369_v17 = vpop.f32.mrb[4].mxu0  ;;  %v1086_v42 = vpop.eup %1085 }
 0x3b5   : > { %v376_v18 = vmul.f32 %v1080_v16, %v369_v17  ;;  %v962_v19 = vpop.f32.mrb[5].mxu0 }
 0x3b6   : > { %v372_v20 = vpop.f32.mrb[6].mxu0 }
 0x3b7   : > { %v377_v22 = vpack.c.bf16 %v376_v18, %v376_v18  ;;  %v963_v23 = vpop.f32.mrb[7].mxu0 }
 0x3b9   : > { %379 = vst.msk [vmem:[#allocation2] sm:$0xf] %vm378_vm5, %v377_v22 }
 0x3bc   : > { %v483_v25 = vpop.f32.mrb[8].mxu0 }
 0x3bd   : > { %v490_v27 = vmul.f32 %v1082_v24, %v483_v25  ;;  %v974_v28 = vpop.f32.mrb[9].mxu0 }
 0x3be   : > { %v486_v29 = vpop.f32.mrb[10].mxu0 }
 0x3bf   : > { %v928_v31 = vpack.c.bf16 %v490_v27, %v490_v27  ;;  %v975_v32 = vpop.f32.mrb[11].mxu0 }
 0x3c1   : > { %495 = vrot.lane.b32.xlu1 %v928_v31, %s1158_s27 }
 0x3c4   : > { %v602_v34 = vpop.f32.mrb[12].mxu0 }
 0x3c5   : > { %v609_v35 = vmul.f32 %v1084_v33, %v602_v34  ;;  %v986_v36 = vpop.f32.mrb[13].mxu0 }
 0x3c6   : > { %v605_v37 = vpop.f32.mrb[14].mxu0 }
 0x3c7   : > { %v929_v38 = vpack.c.bf16 %v609_v35, %v609_v35  ;;  %v987_v39 = vpop.f32.mrb[15].mxu0 }
 0x3c9   : > { %614 = vrot.lane.b32.xlu0 %v929_v38, %s1156_s22  ;;  %s925_s22 = sshll.u32 %s1208_s19, 7  ;;  %s824_s19 = scalar_lea.sflag [#allocation4], %s186_s12 }
 0x3ca   : > { %s1345_s30 = scalar_lea.hbm %s1392_s4, %s925_s22 }
 0x3e9   : > { %v721_v43 = vpop.f32.mrb[16].mxu0 }
 0x3ea   : > { %v728_v44 = vmul.f32 %v1086_v42, %v721_v43  ;;  %v998_v45 = vpop.f32.mrb[17].mxu0 }
 0x3eb   : > { %v724_v46 = vpop.f32.mrb[18].mxu0 }
 0x3ec   : > { %v930_v47 = vpack.c.bf16 %v728_v44, %v728_v44  ;;  %v999_v48 = vpop.f32.mrb[19].mxu0 }
 0x3ee   : > { %733 = vrot.lane.b32.xlu1 %v930_v47, %s1157_s23  ;;  %s188_s23 = scalar_lea.vmem [#allocation3], %s900_s13 }
 0x3ef   : > { %s837_s27 = sshll.u32 %s188_s23, 4  ;;  %s1347_s27 = int_to_ptr.vmem [resolvable:$true] %s837_s27 }
 0x3f0   : > { %s1087_s5 = scalar_lea.vmem %s1347_s27, 128  ;;  %p1094_p0 = scmp.lt.s32.totalorder %s1347_s27, %s1092_s7 }
 0x3f1   : > { %p1088_p11 = scmp.ne.s32.totalorder %s1347_s27, %s1087_s5  ;;  %p1095_p1 = scmp.lt.s32.totalorder %s1093_s8, %s1087_s5 }
 0x3f3   : > { %p1089_p12 = pnand %p1088_p11, %p1225_p5  ;;  %p1096_p2 = por %p1095_p1, %p1094_p0 }
 0x3f5   : > { %p1090_p13 = pneg %p1089_p12 }
 0x3f7   : > { %p1097_p3 = pnand %p1096_p2, %p1090_p13 }
 0x433   : > { %v496_v49 = vpop.permute.xlu1 %495 }
 0x434   : > { %499 = vst.msk [vmem:[#allocation2] sm:$0xf] %vm498_vm6, %v496_v49 }
 0x43b   : > { %v615_v50 = vpop.permute.xlu0 %614 }
 0x43c   : > { %618 = vst.msk [vmem:[#allocation2] sm:$0xf] %vm617_vm7, %v615_v50 }
 0x460   : > { %v734_v7 = vpop.permute.xlu1 %733 }
 0x461   : > { %737 = vst.msk [vmem:[#allocation2] sm:$0xf] %vm736_vm8, %v734_v7 }
 0x468   : > { %v738_v51 = vld [vmem:[#allocation2] sm:$0xf] }
 0x469   : > { %1009 = vmatmul.mubr.msk.bf16.vlgmr.msra.gmra.mrb[16].mxu1 %vm778_vm9, %v738_v51 }
 0x53c   : > { %v816_v53 = vpop.f32.mrb[16].mxu1 }
 0x53d   : > { %v817_v54 = vadd.f32 %v918_v52, %v816_v53  ;;  %v1010_v55 = vpop.f32.mrb[17].mxu1 }
 0x53e   : > { %v819_v56 = vpop.f32.mrb[18].mxu1 }
 0x53f   : > { %v1011_v57 = vpop.f32.mrb[19].mxu1  ;;  %822 = vst.msk [vmem:[%s188_s23] sm:$0xff] %vm220_vm0, %v817_v54 }
 0x540   : > { %1100 = shalt.err (!%p1097_p3)
}
 0x541   : > { %s1101_s9 = scalar_lea.hbm %s1345_s30, 128  ;;  %s1105_s12 = scalar_lea.hbm %s1392_s4, 256 }
 0x542   : > { %p1102_p4 = scmp.ne.s32.totalorder %s1345_s30, %s1101_s9  ;;  %p1106_p9 = scmp.lt.u32.totalorder %s1345_s30, %s1392_s4 }
 0x543   : > { %p1107_p10 = scmp.lt.u32.totalorder %s1105_s12, %s1101_s9  ;;  %p1109_p12 = scmp.lt.u32.totalorder %s1101_s9, %s1345_s30 }
 0x544   : > { %p1103_p7 = pnand %p1102_p4, %p1225_p5 }
 0x545   : > { %p1108_p11 = por %p1107_p10, %p1106_p9 }
 0x546   : > { %p1104_p8 = pneg %p1103_p7 }
 0x547   : > { %p1110_p13 = por %p1109_p12, %p1108_p11 }
 0x549   : > { %p1111_p0 = pnand %p1110_p13, %p1104_p8 }
 0x54b   : > { %1114 = shalt.err (!%p1111_p0)
}
 0x54c   : > { %1012 = dma.vmem_to_hbm [thread:$0]  (%p1225_p5), %s1347_s27, 128, %s1345_s30, %s824_s19  }
 0x54d PF: > { %p1018_p1 = scmp.ge.s32.totalorder %s1149_s18, 2  ;;  %s849_s20 = sand.u32 1, %s1137_s15  }
 0x54e   : > { %s850_s22 = scalar_lea.sflag [#allocation4], %s849_s20 }
 0x54f   : > { %p1015_p2 = pnand %p1018_p1, %p1229_p6 }
 0x551   : > { %1132 = dma.done.wait (!%p1015_p2), %s850_s22, 128  }
 0x552   : > { %1134 = vsyncadd (!%p1015_p2), %s850_s22, 4294967168  ;;  %p14_p3 = scmp.ge.s32.totalorder %s1212_s21, 4   ;;  %s1395_s15 = smov %s1141_s16 }
 0x553   : > { %s1396_s16 = smov %s1145_s17  ;;  %s1397_s17 = smov %s1223_s24 }
 0x554   : > { %s1398_s18 = smov %s1212_s21  ;;  %16 = sbr.rel (!%p14_p3) target bundleno = 3 (0x3), region = 71 }
 0x55b   :  { %855 = vsyncpa [#allocation4], 1 }
 0x55c   :  { %857 = vsyncpa [#allocation4 + $0x1], 1 }

</bundles_post_ra>
